<compile_context>
chip_gen: v7x
topology: tpu7x:2x2x1
jax: 0.10.0
libtpu: 0.0.40
codegen_flags: <defaults>
</compile_context>

<pallas_src>
import jax
import jax.numpy as jnp
from jax.experimental import pallas as pl
from jax.experimental.pallas import tpu as pltpu

LANES = 128
DEFAULT_BLOCK_EDGES = 32768      # edges per grid step (multiple of 128)
_MIN_EDGES_FOR_SPLIT = 4096      # above this, force >= 2 grid steps (v7x 2 TCs)


def _edge_kernel(slab_ref, out_ref):
    """One lane-dense block of edges.

    slab_ref : (18, bE)  rows 0-2 src pos, 3-5 dst pos, 6-8 cell_shift,
               rows 9-17 the per-edge 3x3 cell, row 9 + i*3 + j = cell[b, i, j].
    out_ref  : (4, bE)   rows 0-2 edge_vec, row 3 edge_length.
    """
    s = slab_ref[...].astype(jnp.float32)

    d = s[3:6, :] - s[0:3, :]                      # pos[dst] - pos[src], (3,bE)

    # contrib[j] = sum_i shift_i * cell[i, j]  (broadcast (1,bE) over (3,bE))
    contrib = (s[6:7, :] * s[9:12, :]
               + s[7:8, :] * s[12:15, :]
               + s[8:9, :] * s[15:18, :])

    ev = d + contrib                               # (3, bE)

    # Direct row stores into the packed output (no concatenate temporary).
    out_ref[0:3, :] = ev.astype(out_ref.dtype)
    l2 = (ev[0:1, :] * ev[0:1, :]
          + ev[1:2, :] * ev[1:2, :]
          + ev[2:3, :] * ev[2:3, :])
    out_ref[3:4, :] = jnp.sqrt(l2).astype(out_ref.dtype)


def edge_preprocess(pos, cell, cell_shift, edge_idx, batch, *,
                    is_stress: bool = False,
                    block_edges: int = DEFAULT_BLOCK_EDGES,
                    lane_major_out: bool = False):
    """Pallas TPU implementation of EdgePreprocess.forward (batch-data path).

    pos:        (N, 3)      node positions
    cell:       (B, 3, 3)   per-graph cells
    cell_shift: (E, 3)      periodic image shifts per edge
    edge_idx:   (2, E)      [src; dst] node indices per edge
    batch:      (N,)        graph index per node

    Returns (edge_vec (E,3), edge_length (E,)); with lane_major_out=True,
    returns edge_vec in the lane-dense (3, E) layout instead (avoids a final
    lane-padded transpose if the consumer can take it).
    """
    del is_stress  # forward-identical; see TODO at top of file.

    dtype = pos.dtype
    E = int(edge_idx.shape[1])
    if E == 0:
        ev_empty = (jnp.zeros((3, 0), dtype=dtype) if lane_major_out
                    else jnp.zeros((0, 3), dtype=dtype))
        return ev_empty, jnp.zeros((0,), dtype=dtype)

    idx_src = edge_idx[0].astype(jnp.int32)
    idx_dst = edge_idx[1].astype(jnp.int32)

    # --- Build the packed lane-dense (18, E) slab without lane-padded
    # --- (E,3)/(E,3,3) intermediates: gather directly in transposed form.
    pos_t = pos.T.astype(dtype)                                     # (3, N)
    pos_src_t = jnp.take(pos_t, idx_src, axis=1)                    # (3, E)
    pos_dst_t = jnp.take(pos_t, idx_dst, axis=1)                    # (3, E)
    sh_t = cell_shift.astype(dtype).T                               # (3, E)
    batch_src = jnp.take(batch.astype(jnp.int32), idx_src, axis=0)  # (E,)
    cell9_t = jnp.reshape(cell, (-1, 9)).T.astype(dtype)            # (9, B), row i*3+j
    cell_e_t = jnp.take(cell9_t, batch_src, axis=1)                 # (9, E)

    slab = jnp.concatenate([pos_src_t, pos_dst_t, sh_t, cell_e_t], axis=0)  # (18, E)

    # --- Tiling: pad edges only to lane / block granularity, clamp the block
    # --- to the real edge count, and force >= 2 grid steps for medium/large
    # --- graphs so both v7x TensorCores get work.
    e_pad128 = pl.cdiv(E, LANES) * LANES
    num_blocks = pl.cdiv(e_pad128, max(LANES, block_edges))
    if num_blocks == 1 and e_pad128 >= _MIN_EDGES_FOR_SPLIT:
        num_blocks = 2
    block_e = pl.cdiv(pl.cdiv(e_pad128, num_blocks), LANES) * LANES
    e_pad = block_e * num_blocks
    pad = e_pad - E
    if pad:
        slab = jnp.pad(slab, ((0, 0), (0, pad)))

    in_spec = pl.BlockSpec((18, block_e), lambda i: (0, i))
    out_spec = pl.BlockSpec((4, block_e), lambda i: (0, i))

    out2d = pl.pallas_call(
        _edge_kernel,
        out_shape=jax.ShapeDtypeStruct((4, e_pad), dtype),
        grid_spec=pltpu.PrefetchScalarGridSpec(
            num_scalar_prefetch=0,
            grid=(num_blocks,),
            in_specs=[in_spec],
            out_specs=out_spec,
        ),
        compiler_params=pltpu.CompilerParams(
            dimension_semantics=("parallel",),
            vmem_limit_bytes=32 * 1024 * 1024),
    )(slab)

    edge_length = out2d[3, :E]                                      # (E,)
    if lane_major_out:
        return out2d[:3, :E], edge_length                           # (3, E)
    # NOTE: this transpose lane-pads 3->128 in TPU layout; use
    # lane_major_out=True if the consumer accepts the (3, E) layout.
    edge_vec = out2d[:3, :E].T                                      # (E, 3)
    return edge_vec, edge_length


def _reference(pos, cell, cell_shift, edge_idx, batch):
    idx_src = edge_idx[0]
    idx_dst = edge_idx[1]
    edge_vec = pos[idx_dst] - pos[idx_src]
    edge_vec = edge_vec + jnp.einsum('ni,nij->nj',
                                     cell_shift.astype(pos.dtype),
                                     cell[batch[idx_src]])
    return edge_vec, jnp.linalg.norm(edge_vec, axis=-1)


if __name__ == "__main__":
    key = jax.random.PRNGKey(0)

    def run_case(num_nodes, num_graphs, num_edges, key):
        k1, k2, k3, k4 = jax.random.split(key, 4)
        pos = jax.random.uniform(k1, (num_nodes, 3), jnp.float32, 0.0, 10.0)
        cell = (jax.random.uniform(k2, (num_graphs, 3, 3), jnp.float32, -1.0, 1.0)
                + 10.0 * jnp.eye(3, dtype=jnp.float32)[None])
        cell_shift = jax.random.randint(k3, (num_edges, 3), -1, 2).astype(jnp.float32)
        edge_idx = jax.random.randint(k4, (2, num_edges), 0, num_nodes).astype(jnp.int32)
        batch = (jnp.arange(num_nodes, dtype=jnp.int32)
                 // max(1, num_nodes // num_graphs)).astype(jnp.int32)
        batch = jnp.clip(batch, 0, num_graphs - 1)

        edge_vec, edge_len = edge_preprocess(pos, cell, cell_shift, edge_idx, batch)
        edge_vec, edge_len = jax.block_until_ready((edge_vec, edge_len))

        ref_vec, ref_len = _reference(pos, cell, cell_shift, edge_idx, batch)
        assert edge_vec.shape == (num_edges, 3) and edge_vec.dtype == pos.dtype
        assert edge_len.shape == (num_edges,) and edge_len.dtype == pos.dtype
        assert jnp.allclose(edge_vec, ref_vec, rtol=1e-5, atol=1e-4), "edge_vec mismatch"
        assert jnp.allclose(edge_len, ref_len, rtol=1e-5, atol=1e-4), "edge_length mismatch"

    k_a, k_b = jax.random.split(key)
    # Small case: non-multiple of 128 edges exercises the lane-padding path.
    run_case(num_nodes=24, num_graphs=2, num_edges=300, key=k_a)
    # Medium case: exercises the multi-block (>=2 grid step) path.
    run_case(num_nodes=64, num_graphs=4, num_edges=5000, key=k_b)

    print("KERNEL_OK")
</pallas_src>

<mosaic_0001>
module attributes {stable_mosaic.version = 11 : i64} {
  func.func @_edge_kernel(%arg0: i32, %arg1: memref<18x384xf32, #tpu.memory_space<vmem>>, %arg2: memref<4x384xf32, #tpu.memory_space<vmem>>) attributes {dimension_semantics = [#tpu.dimension_semantics<parallel>], iteration_bounds = array<i64: 1>, scalar_prefetch = 0 : i64, scratch_operands = 0 : i64, tpu.core_type = #tpu.core_type<tc>, window_params = [{transform_indices = @transform_0, window_bounds = array<i64: 18, 384>}, {transform_indices = @transform_1, window_bounds = array<i64: 4, 384>}]} {
    %c0 = arith.constant 0 : index
    %c0_0 = arith.constant 0 : index
    %0 = vector.load %arg1[%c0, %c0_0] : memref<18x384xf32, #tpu.memory_space<vmem>>, vector<18x384xf32>
    %1 = vector.extract_strided_slice %0 {offsets = [3, 0], sizes = [3, 384], strides = [1, 1]} : vector<18x384xf32> to vector<3x384xf32>
    %2 = vector.extract_strided_slice %0 {offsets = [0, 0], sizes = [3, 384], strides = [1, 1]} : vector<18x384xf32> to vector<3x384xf32>
    %3 = arith.subf %1, %2 : vector<3x384xf32>
    %4 = vector.extract_strided_slice %0 {offsets = [6, 0], sizes = [1, 384], strides = [1, 1]} : vector<18x384xf32> to vector<1x384xf32>
    %5 = vector.extract_strided_slice %0 {offsets = [9, 0], sizes = [3, 384], strides = [1, 1]} : vector<18x384xf32> to vector<3x384xf32>
    %6 = vector.broadcast %4 : vector<1x384xf32> to vector<3x384xf32>
    %7 = arith.mulf %6, %5 : vector<3x384xf32>
    %8 = vector.extract_strided_slice %0 {offsets = [7, 0], sizes = [1, 384], strides = [1, 1]} : vector<18x384xf32> to vector<1x384xf32>
    %9 = vector.extract_strided_slice %0 {offsets = [12, 0], sizes = [3, 384], strides = [1, 1]} : vector<18x384xf32> to vector<3x384xf32>
    %10 = vector.broadcast %8 : vector<1x384xf32> to vector<3x384xf32>
    %11 = arith.mulf %10, %9 : vector<3x384xf32>
    %12 = arith.addf %7, %11 : vector<3x384xf32>
    %13 = vector.extract_strided_slice %0 {offsets = [8, 0], sizes = [1, 384], strides = [1, 1]} : vector<18x384xf32> to vector<1x384xf32>
    %14 = vector.extract_strided_slice %0 {offsets = [15, 0], sizes = [3, 384], strides = [1, 1]} : vector<18x384xf32> to vector<3x384xf32>
    %15 = vector.broadcast %13 : vector<1x384xf32> to vector<3x384xf32>
    %16 = arith.mulf %15, %14 : vector<3x384xf32>
    %17 = arith.addf %12, %16 : vector<3x384xf32>
    %18 = arith.addf %3, %17 : vector<3x384xf32>
    %c0_1 = arith.constant 0 : index
    %c0_2 = arith.constant 0 : index
    %19 = vector.load %arg2[%c0_1, %c0_2] : memref<4x384xf32, #tpu.memory_space<vmem>>, vector<3x384xf32>
    tpu.vector_store %arg2[%c0_1, %c0_2], %18 {strides = array<i32>} : memref<4x384xf32, #tpu.memory_space<vmem>>, vector<3x384xf32>,
    %20 = vector.extract_strided_slice %18 {offsets = [0, 0], sizes = [1, 384], strides = [1, 1]} : vector<3x384xf32> to vector<1x384xf32>
    %21 = vector.extract_strided_slice %18 {offsets = [0, 0], sizes = [1, 384], strides = [1, 1]} : vector<3x384xf32> to vector<1x384xf32>
    %22 = arith.mulf %20, %21 : vector<1x384xf32>
    %23 = vector.extract_strided_slice %18 {offsets = [1, 0], sizes = [1, 384], strides = [1, 1]} : vector<3x384xf32> to vector<1x384xf32>
    %24 = vector.extract_strided_slice %18 {offsets = [1, 0], sizes = [1, 384], strides = [1, 1]} : vector<3x384xf32> to vector<1x384xf32>
    %25 = arith.mulf %23, %24 : vector<1x384xf32>
    %26 = arith.addf %22, %25 : vector<1x384xf32>
    %27 = vector.extract_strided_slice %18 {offsets = [2, 0], sizes = [1, 384], strides = [1, 1]} : vector<3x384xf32> to vector<1x384xf32>
    %28 = vector.extract_strided_slice %18 {offsets = [2, 0], sizes = [1, 384], strides = [1, 1]} : vector<3x384xf32> to vector<1x384xf32>
    %29 = arith.mulf %27, %28 : vector<1x384xf32>
    %30 = arith.addf %26, %29 : vector<1x384xf32>
    %31 = math.sqrt %30 : vector<1x384xf32>
    %c3 = arith.constant 3 : index
    %c0_3 = arith.constant 0 : index
    %32 = vector.load %arg2[%c3, %c0_3] : memref<4x384xf32, #tpu.memory_space<vmem>>, vector<1x384xf32>
    tpu.vector_store %arg2[%c3, %c0_3], %31 {strides = array<i32>} : memref<4x384xf32, #tpu.memory_space<vmem>>, vector<1x384xf32>,
    return
  }
  func.func @transform_0(%arg0: i32) -> (i32, i32) {
    %c0_i32 = arith.constant 0 : i32
    %c0_i32_0 = arith.constant 0 : i32
    return %c0_i32, %arg0 : i32, i32
  }
  func.func @transform_1(%arg0: i32) -> (i32, i32) {
    %c0_i32 = arith.constant 0 : i32
    %c0_i32_0 = arith.constant 0 : i32
    return %c0_i32, %arg0 : i32, i32
  }
}

</mosaic_0001>

<bundles_post_ra>
// kernel: tpu_custom_call.1
= control target key start
LH: loop header
LB: loop body
LE: loop exit
PB: predicated region body
PF: predicated region fallthrough
CT: control target
= control target key end

     0   :  { %6 = vsyncpa [#allocation3], 0  ;;  %s372_s0 = inlined_call_operand.hbm [shape: f32[18,384], index: 0, kind: input, shape index: {}]   ;;  %s373_s1 = inlined_call_operand.hbm [shape: f32[4,384], index: 1, kind: output, shape index: {}]  }
   0x1   :  { %7 = vsyncpa [#allocation4], 0  ;;  %s314_s6 = smov [#allocation2]   ;;  %s266_s10 = scalar_lea.hbm %s372_s0, 1152 }
   0x2   :  { %s13_s7 = sshll.u32 %s314_s6, 4  ;;  %p267_p0 = scmp.ne.s32.totalorder %s372_s0, %s266_s10  ;;  %s14_s7 = int_to_ptr.vmem [resolvable:$true] %s13_s7 }
   0x3   :  { %p270_p1 = scmp.lt.u32.totalorder %s266_s10, %s372_s0 }
   0x5   :  { %p272_p2 = pnand %p270_p1, %p267_p0 }
   0x7   :  { %275 = shalt.err (!%p272_p2)
}
   0x8   :  { %s276_s15 = scalar_lea.vmem %s14_s7, 1152  ;;  %p281_p4 = scmp.lt.s32.totalorder %s14_s7, %s14_s7 }
   0x9   :  { %p277_p3 = scmp.ne.s32.totalorder %s14_s7, %s276_s15  ;;  %p282_p5 = scmp.lt.s32.totalorder %s276_s15, %s276_s15 }
   0xb   :  { %p283_p6 = por %p282_p5, %p281_p4 }
   0xd   :  { %p284_p7 = pnand %p283_p6, %p277_p3 }
   0xf   :  { %287 = shalt.err (!%p284_p7)
}
  0x10   :  { %s315_s16 = smov 384   ;;  %s316_s17 = smov 24  }
  0x11   :  { %19 = dma.hbm_to_vmem [thread:$0]  %s372_s0, 1152, %s14_s7, [#allocation3], %s315_s16, %s315_s16, %s316_s17  }
  0x12   :  { %310 = dma.done.wait [#allocation3], 1152  }
  0x13   :  { %311 = vsyncadd [#allocation3], 4294966144  ;;  %v44_v0 = vlaneseq  ;;  %v23_v5 = vld [vmem:[#allocation2] sm:$0xff]  ;;  %v24_v6 = vld [vmem:[#allocation2 + $0x8] sm:$0xff]  ;;  %vm110_vm0 = vcmask 1041408   ;;  %vm144_vm1 = vcmask 1040384  }
  0x14   :  { %v26_v7 = vld [vmem:[#allocation2 + $0x18] sm:$0xff]  ;;  %v27_v8 = vld [vmem:[#allocation2 + $0x20] sm:$0xff]  ;;  %v29_v12 = vld [vmem:[#allocation2 + $0x30] sm:$0x3]  ;;  %v35_v17 = vrot.slane %v23_v5, 5  ;;  %v36_v24 = vrot.slane %v24_v6, 5 }
  0x15   :  { %v342_v1 = vshrl.u32 %v44_v0, 7  ;;  %v30_v13 = vld [vmem:[#allocation2 + $0x38] sm:$0x3]  ;;  %v25_v28 = vld [vmem:[#allocation2 + $0x10] sm:$0xff]  ;;  %v28_v29 = vld [vmem:[#allocation2 + $0x28] sm:$0xff]  ;;  %vm145_vm2 = vcmask 1044484  }
  0x16   :  { %v41_v37 = vsub.f32 %v23_v5, %v35_v17  ;;  %v31_v39 = vld [vmem:[#allocation2 + $0x40] sm:$0x3]  ;;  %v42_v42 = vsub.f32 %v24_v6, %v36_v24  ;;  %v37_v55 = vrot.slane %v25_v28, 5  ;;  %vm350_vm3 = vmor %vm144_vm1, %vm145_vm2  ;;  %s318_s0 = smov [#allocation5]   ;;  %vm234_vm10 = vcmp.lt.s32.totalorder %v44_v0, 384 }
  0x17   :  { %v46_v2 = vsub.s32 6, %v342_v1  ;;  %v61_v3 = vsub.s32 7, %v342_v1  ;;  %v88_v4 = vsub.s32 0, %v342_v1  ;;  %s244_s20 = sshll.u32 %s318_s0, 4  ;;  %s245_s20 = int_to_ptr.vmem [resolvable:$true] %s244_s20 }
  0x18   :  { %s288_s21 = scalar_lea.vmem %s245_s20, 192  ;;  %p293_p9 = scmp.lt.s32.totalorder %s245_s20, %s245_s20 }
  0x19   :  { %v47_v9 = vrot.slane %v23_v5, %v46_v2  ;;  %v51_v10 = vrot.slane %v24_v6, %v46_v2  ;;  %v62_v11 = vrot.slane %v23_v5, %v61_v3  ;;  %v66_v14 = vrot.slane %v24_v6, %v61_v3  ;;  %p289_p8 = scmp.ne.s32.totalorder %s245_s20, %s288_s21  ;;  %p294_p10 = scmp.lt.s32.totalorder %s288_s21, %s288_s21 }
  0x1a   :  { %v89_v15 = vrot.slane %v26_v7, %v88_v4  ;;  %v93_v16 = vrot.slane %v27_v8, %v88_v4  ;;  %v55_v33 = vrot.slane %v25_v28, %v46_v2  ;;  %v70_v40 = vrot.slane %v25_v28, %v61_v3 }
  0x1b   :  { %v56_v18 = vmul.f32 %v47_v9, %v26_v7  ;;  %v71_v19 = vmul.f32 %v62_v11, %v26_v7  ;;  %v57_v20 = vmul.f32 %v51_v10, %v27_v8  ;;  %v72_v21 = vmul.f32 %v66_v14, %v27_v8  ;;  %p295_p11 = por %p294_p10, %p293_p9 }
  0x1c   :  { %v98_v22 = vmul.f32 %v89_v15, %v26_v7  ;;  %v99_v23 = vmul.f32 %v93_v16, %v27_v8  ;;  %v101_v26 = vmul.f32 %v89_v15, %v29_v12  ;;  %v102_v27 = vmul.f32 %v93_v16, %v30_v13 }
  0x1d   :  { %v77_v25 = vrot.slane %v71_v19, 3  ;;  %v78_v30 = vrot.slane %v72_v21, 3  ;;  %v97_v41 = vrot.slane %v28_v29, %v88_v4  ;;  %v58_v45 = vmul.f32 %v55_v33, %v28_v29  ;;  %p296_p12 = pnand %p295_p11, %p289_p8 }
  0x1e   :  { %v111_v31 = vrot.slane %v98_v22, 6  ;;  %v114_v32 = vrot.slane %v99_v23, 6  ;;  %v112_v35 = vrot.slane %v101_v26, 6  ;;  %v115_v36 = vrot.slane %v102_v27, 6 }
  0x1f   :  { %v83_v34 = vadd.f32 %v77_v25, %v56_v18  ;;  %v84_v38 = vadd.f32 %v78_v30, %v57_v20  ;;  %v73_v48 = vmul.f32 %v70_v40, %v28_v29  ;;  %v100_v49 = vmul.f32 %v97_v41, %v28_v29 }
  0x20   :  { %v113_v43 = vsel %vm110_vm0, %v111_v31, %v112_v35  ;;  %v116_v44 = vsel %vm110_vm0, %v114_v32, %v115_v36  ;;  %v103_v50 = vmul.f32 %v97_v41, %v31_v39  ;;  %v43_v4 = vsub.f32 %v25_v28, %v37_v55 }
  0x21   :  { %v123_v46 = vadd.f32 %v113_v43, %v83_v34  ;;  %v124_v47 = vadd.f32 %v116_v44, %v84_v38  ;;  %v79_v53 = vrot.slane %v73_v48, 3  ;;  %v117_v54 = vrot.slane %v100_v49, 6 }
  0x22   :  { %v118_v56 = vrot.slane %v103_v50, 6  ;;  %v317_v28 = vmov 1966171168  }
  0x23   :  { %v129_v51 = vrot.slane %v123_v46, 6  ;;  %v130_v52 = vrot.slane %v124_v47, 6  ;;  %v85_v59 = vadd.f32 %v79_v53, %v58_v45  ;;  %v209_v29 = vunpack.c.l.s4 %v317_v28 }
  0x24   :  { %v119_v60 = vsel %vm110_vm0, %v117_v54, %v118_v56 }
  0x25   :  { %v135_v57 = vadd.f32 %v129_v51, %v41_v37  ;;  %v136_v58 = vadd.f32 %v130_v52, %v42_v42  ;;  %v125_v5 = vadd.f32 %v119_v60, %v85_v59  ;;  %v210_v36 = vunpack.c.0.s8 %v209_v29 }
  0x27   :  { %v141_v61 = vcombine.low %v135_v57, %v136_v58  ;;  %v142_v62 = vcombine.high %v135_v57, %v136_v58  ;;  %v159_v63 = vmul.f32 %v135_v57, %v135_v57  ;;  %v160_v2 = vmul.f32 %v136_v58, %v136_v58 }
  0x28   :  { %v131_v12 = vrot.slane %v125_v5, 6  ;;  %v213_v42 = vsub.s32 %v210_v36, %v342_v1 }
  0x29   :  { %v253_v6 = vrot.slane %v141_v61, 11  ;;  %v149_v7 = vrot.slane %v142_v62, 7  ;;  %v165_v8 = vrot.slane %v159_v63, 1  ;;  %v166_v9 = vrot.slane %v160_v2, 1 }
  0x2a   :  { %v174_v10 = vrot.slane %v159_v63, 2  ;;  %v175_v11 = vrot.slane %v160_v2, 2  ;;  %v137_v16 = vadd.f32 %v131_v12, %v43_v4 }
  0x2b   :  { %v150_v13 = vsel %vm350_vm3, %v253_v6, %v149_v7  ;;  %v171_v14 = vadd.f32 %v165_v8, %v159_v63  ;;  %v172_v15 = vadd.f32 %v166_v9, %v160_v2 }
  0x2c   :  { %157 = vst [vmem:[#allocation5] sm:$0x77] %v150_v13  ;;  %v143_v19 = vcombine.high %v137_v16, %v137_v16  ;;  %v254_v20 = vrot.slane %v137_v16, 11  ;;  %v161_v21 = vmul.f32 %v137_v16, %v137_v16 }
  0x2d   :  { %v180_v17 = vadd.f32 %v174_v10, %v171_v14  ;;  %v181_v18 = vadd.f32 %v175_v11, %v172_v15 }
  0x2e   :  { %v153_v22 = vrot.slane %v143_v19, 7  ;;  %v167_v23 = vrot.slane %v161_v21, 1  ;;  %v176_v24 = vrot.slane %v161_v21, 2 }
  0x2f   :  { %260 = vrsqrt.f32 %v180_v17  ;;  %vm185_vm4 = vcmp.eq.f32.partialorder %v180_v17, inf  ;;  %v188_v31 = vand.u32 2147483648, %v180_v17  ;;  %vm187_vm5 = vcmp.eq.f32.partialorder %v180_v17, 0.0 }
  0x30   :  { %262 = vrsqrt.f32 %v181_v18  ;;  %v154_v25 = vsel %vm350_vm3, %v254_v20, %v153_v22  ;;  %v173_v26 = vadd.f32 %v167_v23, %v161_v21  ;;  %vm192_vm6 = vcmp.eq.f32.partialorder %v181_v18, inf }
  0x31   :  { %158 = vst [vmem:[#allocation5 + $0x8] sm:$0x7] %v154_v25  ;;  %v195_v34 = vand.u32 2147483648, %v181_v18  ;;  %vm194_vm7 = vcmp.eq.f32.partialorder %v181_v18, 0.0 }
  0x32   :  { %v182_v27 = vadd.f32 %v176_v24, %v173_v26 }
  0x34   :  { %264 = vrsqrt.f32 %v182_v27  ;;  %vm199_vm8 = vcmp.eq.f32.partialorder %v182_v27, inf  ;;  %v202_v44 = vand.u32 2147483648, %v182_v27  ;;  %vm201_vm9 = vcmp.eq.f32.partialorder %v182_v27, 0.0 }
  0x39   :  { %v261_v30 = vpop.eup %260 }
  0x3a   :  { %v263_v32 = vpop.eup %262  ;;  %v184_v33 = vmul.f32 %v261_v30, %v180_v17 }
  0x3b   :  { %v191_v35 = vmul.f32 %v263_v32, %v181_v18 }
  0x3c   :  { %v186_v37 = vsel %vm185_vm4, %v180_v17, %v184_v33 }
  0x3d   :  { %v189_v38 = vsel %vm187_vm5, %v188_v31, %v186_v37  ;;  %v193_v39 = vsel %vm192_vm6, %v181_v18, %v191_v35 }
  0x3e   :  { %v196_v40 = vsel %vm194_vm7, %v195_v34, %v193_v39  ;;  %v265_v43 = vpop.eup %264 }
  0x3f   :  { %v207_v41 = vcombine.low %v189_v38, %v196_v40  ;;  %v198_v45 = vmul.f32 %v265_v43, %v182_v27 }
  0x41   :  { %v200_v46 = vsel %vm199_vm8, %v182_v27, %v198_v45  ;;  %v214_v47 = vrot.slane %v207_v41, %v213_v42 }
  0x42   :  { %v203_v48 = vsel %vm201_vm9, %v202_v44, %v200_v46 }
  0x43   :  { %v221_v49 = vrot.slane %v203_v48, %v213_v42 }
  0x45   :  { %v222_v50 = vcombine.high %v214_v47, %v221_v49 }
  0x47   :  { %v229_v51 = vrot.slane %v222_v50, %v213_v42 }
  0x49   :  { %v230_v52 = vcombine.high %v229_v51, %v229_v51 }
  0x4b   :  { %237 = vst.msk [vmem:[#allocation5 + $0x3] ss:$4 sm:$0x7] %vm234_vm10, %v230_v52 }
  0x4c   :  { %299 = shalt.err (!%p296_p12)
}
  0x4d   :  { %s300_s24 = scalar_lea.hbm %s373_s1, 192 }
  0x4e   :  { %p301_p13 = scmp.ne.s32.totalorder %s373_s1, %s300_s24  ;;  %p304_p0 = scmp.lt.u32.totalorder %s300_s24, %s373_s1 }
  0x50   :  { %p306_p1 = pnand %p304_p0, %p301_p13 }
  0x52   :  { %309 = shalt.err (!%p306_p1)
}
  0x53   :  { %247 = dma.vmem_to_hbm [thread:$0]  %s245_s20, 192, %s373_s1, [#allocation4]  }
  0x54   :  { %312 = dma.done.wait [#allocation4], 192  }
  0x55   :  { %313 = vsyncadd [#allocation4], 4294967104 }
  0x56   :  { %251 = vsyncpa [#allocation3], 1 }
  0x57   :  { %252 = vsyncpa [#allocation4], 1 }

</bundles_post_ra>
